<compile_context>
chip_gen: v7x
topology: tpu7x:2x2x1
jax: 0.10.0
libtpu: 0.0.40
codegen_flags: <defaults>
</compile_context>

<pallas_src>
import jax
import jax.numpy as jnp
from jax.experimental import pallas as pl
from jax.experimental.pallas import tpu as pltpu


def _pick_tblk(T, max_blk=8):
    """Largest divisor of T that is <= max_blk (statically unrolled per block)."""
    for cand in range(min(T, max_blk), 0, -1):
        if T % cand == 0:
            return cand
    return 1


def _lstm_decoder_kernel(x_ref, h0_ref, c0_ref,
                         w_in_ref, b_ref, w_big_ref, bout_ref,
                         y_ref, h_out_ref, c_out_ref):
    """Runs T_blk LSTM steps per grid iteration.

    Gate order matches PyTorch nn.LSTM: [i, f, g, o].
    h_out_ref / c_out_ref have a constant index_map -> they stay resident in
    VMEM across the whole grid and serve as the recurrent carry; they are
    written back to HBM once, after the last block.
    """
    tb = pl.program_id(0)
    T_blk, B, C = x_ref.shape
    H = h0_ref.shape[1]

    # Initialize the recurrent carry from the user-provided state on block 0.
    @pl.when(tb == 0)
    def _():
        h_out_ref[...] = h0_ref[...]
        c_out_ref[...] = c0_ref[...]

    # Input projection for the whole time block in one MXU matmul:
    #   (T_blk*B, C) @ (C, 4H) + (b_ih + b_hh)          -> (T_blk*B, 4H)
    gin = jnp.dot(x_ref[...].reshape(T_blk * B, C), w_in_ref[...],
                  preferred_element_type=jnp.float32) + b_ref[...]

    # Hoisted resident operands (read once per block, not per step).
    w_big = w_big_ref[...]          # (H, 4H + C) = [W_hh^T | W_out^T]
    b_out = bout_ref[...]           # (1, C)

    h = h_out_ref[...]              # (B, H)
    c = c_out_ref[...]              # (B, H)

    # Statically-unrolled recurrence over the time block (T_blk is small).
    for t in range(T_blk):
        # One fused MXU push: recurrent gate contribution for step t AND the
        # output projection of h_{t-1} (= y_{t-1}).
        hr = jnp.dot(h, w_big, preferred_element_type=jnp.float32)  # (B, 4H+C)
        if t > 0:
            y_ref[t - 1] = (hr[:, 4 * H:] + b_out).astype(y_ref.dtype)

        gates = gin[t * B:(t + 1) * B, :] + hr[:, :4 * H]            # (B, 4H)

        # Two full-width transcendentals over the whole gate block, then slice.
        sig = jax.nn.sigmoid(gates)
        th = jnp.tanh(gates)
        i_g = sig[:, 0 * H:1 * H]
        f_g = sig[:, 1 * H:2 * H]
        g_g = th[:, 2 * H:3 * H]
        o_g = sig[:, 3 * H:4 * H]

        c = f_g * c + i_g * g_g
        h = o_g * jnp.tanh(c)

    # Epilogue: output projection for the block's last step
    # (lane offset 4H = 128 is vreg-aligned, so the W_big column slice is cheap).
    y_ref[T_blk - 1] = (jnp.dot(h, w_big[:, 4 * H:],
                                preferred_element_type=jnp.float32)
                        + b_out).astype(y_ref.dtype)

    # Carry state to the next block (written back to HBM after the final one).
    h_out_ref[...] = h
    c_out_ref[...] = c


def prepare_params(params):
    """One-time parameter preparation (keep OUT of the per-step hot path)."""
    C = params["w_ih"].shape[1]
    H = params["w_hh"].shape[1]
    w_in = params["w_ih"].T                                            # (C, 4H)
    b = (params["b_ih"] + params["b_hh"]).reshape(1, 4 * H)            # fused bias
    w_big = jnp.concatenate([params["w_hh"].T, params["w_out"].T],
                            axis=1)                                    # (H, 4H+C)
    b_out = params["b_out"].reshape(1, C)
    return {"w_in": w_in, "b": b, "w_big": w_big, "b_out": b_out, "C": C, "H": H}


def rnn_decoder_decode(xs, h0, c0, prep, max_tblk=8):
    """Fused T-step decode in one pallas_call.

    xs: (T, B, C) teacher-forced inputs; h0, c0: (B, H).
    Returns (ys (T, B, C), h_T (B, H), c_T (B, H)).
    """
    T, B, C = xs.shape
    H = h0.shape[1]
    assert C == prep["C"] and H == prep["H"]

    T_blk = _pick_tblk(T, max_tblk)
    num_blocks = T // T_blk
    const2d = lambda tb: (0, 0)

    flops = (2 * T * B * C * 4 * H                 # input projection
             + 2 * T * B * H * (4 * H + C)         # fused recurrent + y projection
             + 2 * num_blocks * B * H * C)         # per-block epilogue
    transcendentals = T * B * 9 * H                # sigmoid(4H) + tanh(4H) + tanh(H)
    bytes_accessed = 4 * (C * 4 * H + 4 * H + H * (4 * H + C) + C   # resident weights
                          + 4 * B * H                               # h0,c0 in / hT,cT out
                          + 2 * T * B * C)                          # xs in, ys out

    ys, h_new, c_new = pl.pallas_call(
        _lstm_decoder_kernel,
        out_shape=(jax.ShapeDtypeStruct((T, B, C), jnp.float32),
                   jax.ShapeDtypeStruct((B, H), jnp.float32),
                   jax.ShapeDtypeStruct((B, H), jnp.float32)),
        grid_spec=pltpu.PrefetchScalarGridSpec(
            num_scalar_prefetch=0,
            grid=(num_blocks,),
            in_specs=[
                pl.BlockSpec((T_blk, B, C), lambda tb: (tb, 0, 0)),   # x block
                pl.BlockSpec((B, H), const2d),                        # h0 (block 0)
                pl.BlockSpec((B, H), const2d),                        # c0 (block 0)
                pl.BlockSpec((C, 4 * H), const2d),                    # W_ih^T
                pl.BlockSpec((1, 4 * H), const2d),                    # fused bias
                pl.BlockSpec((H, 4 * H + C), const2d),                # [W_hh^T|W_out^T]
                pl.BlockSpec((1, C), const2d),                        # b_out
            ],
            out_specs=[
                pl.BlockSpec((T_blk, B, C), lambda tb: (tb, 0, 0)),   # ys block
                pl.BlockSpec((B, H), const2d),                        # h_T (resident carry)
                pl.BlockSpec((B, H), const2d),                        # c_T (resident carry)
            ],
        ),
        compiler_params=pltpu.CompilerParams(
            dimension_semantics=("arbitrary",),                       # sequential carry
        ),
        cost_estimate=pl.CostEstimate(flops=flops,
                                      transcendentals=transcendentals,
                                      bytes_accessed=bytes_accessed),
    )(xs, h0, c0, prep["w_in"], prep["b"], prep["w_big"], prep["b_out"])

    return ys, h_new, c_new


def rnn_decoder_forward(x, h, c, prep):
    """Single-step forward matching RNNDecoder.forward semantics.

    x: (B, C), h: (B, H), c: (B, H)
    returns (output, hidden (B, H), cell (B, H)) where output is (1, B, C) for
    B > 1 and (1, C) for B == 1 (matching PyTorch's squeeze(1) behavior).
    """
    B, C = x.shape
    ys, h_new, c_new = rnn_decoder_decode(x[None], h, c, prep)
    y = ys[0]                                    # (B, C)
    if B == 1:
        output = y.reshape(1, C)                 # squeeze(1) removed the batch dim
    else:
        output = y.reshape(1, B, C)              # squeeze(1) was a no-op
    return output, h_new, c_new


# ----------------------------- pure-JAX references -----------------------------

def _reference_step(x, h, c, params):
    gates = (x @ params["w_ih"].T + params["b_ih"]
             + h @ params["w_hh"].T + params["b_hh"])
    H = h.shape[1]
    i = jax.nn.sigmoid(gates[:, 0 * H:1 * H])
    f = jax.nn.sigmoid(gates[:, 1 * H:2 * H])
    g = jnp.tanh(gates[:, 2 * H:3 * H])
    o = jax.nn.sigmoid(gates[:, 3 * H:4 * H])
    c_new = f * c + i * g
    h_new = o * jnp.tanh(c_new)
    y = h_new @ params["w_out"].T + params["b_out"]
    return y, h_new, c_new


def _reference_decode(xs, h, c, params):
    ys = []
    for t in range(xs.shape[0]):
        y, h, c = _reference_step(xs[t], h, c, params)
        ys.append(y)
    return jnp.stack(ys), h, c


if __name__ == "__main__":
    # config: n_channels=16, decoder_hidden=32, decoder_layers=1, bidirectional=False
    B, C, H = 8, 16, 32

    key = jax.random.PRNGKey(0)
    ks = jax.random.split(key, 11)
    scale = 1.0 / jnp.sqrt(H)

    params = {
        "w_ih": jax.random.uniform(ks[0], (4 * H, C), jnp.float32, -scale, scale),
        "w_hh": jax.random.uniform(ks[1], (4 * H, H), jnp.float32, -scale, scale),
        "b_ih": jax.random.uniform(ks[2], (4 * H,), jnp.float32, -scale, scale),
        "b_hh": jax.random.uniform(ks[3], (4 * H,), jnp.float32, -scale, scale),
        "w_out": jax.random.uniform(ks[4], (C, H), jnp.float32, -scale, scale),
        "b_out": jax.random.uniform(ks[5], (C,), jnp.float32, -scale, scale),
    }
    prep = prepare_params(params)   # one-time: transpose/stack weights, fuse biases

    x = jax.random.normal(ks[6], (B, C), jnp.float32)
    h0 = jax.random.normal(ks[7], (B, H), jnp.float32)
    c0 = jax.random.normal(ks[8], (B, H), jnp.float32)

    # --- single-step forward (exact RNNDecoder.forward semantics), grid=(1,) ---
    out, h_new, c_new = rnn_decoder_forward(x, h0, c0, prep)
    jax.block_until_ready((out, h_new, c_new))

    ref_y, ref_h, ref_c = _reference_step(x, h0, c0, params)
    assert out.shape == (1, B, C) and h_new.shape == (B, H) and c_new.shape == (B, H)
    assert jnp.allclose(out, ref_y.reshape(1, B, C), atol=1e-5), "output mismatch"
    assert jnp.allclose(h_new, ref_h, atol=1e-5), "hidden mismatch"
    assert jnp.allclose(c_new, ref_c, atol=1e-5), "cell mismatch"

    # --- fused multi-step decode, single time block (T=4 -> grid=(1,)) ---
    T1 = 4
    xs1 = jax.random.normal(ks[9], (T1, B, C), jnp.float32)
    ys1, hT1, cT1 = rnn_decoder_decode(xs1, h0, c0, prep)
    jax.block_until_ready((ys1, hT1, cT1))

    ref_ys1, ref_hT1, ref_cT1 = _reference_decode(xs1, h0, c0, params)
    assert ys1.shape == (T1, B, C)
    assert jnp.allclose(ys1, ref_ys1, atol=1e-5), "T=4 output mismatch"
    assert jnp.allclose(hT1, ref_hT1, atol=1e-5), "T=4 hidden mismatch"
    assert jnp.allclose(cT1, ref_cT1, atol=1e-5), "T=4 cell mismatch"

    # --- multi-block decode (T=12 -> T_blk=6, grid=(2,)) to exercise the
    #     cross-block h/c carry in the resident output blocks ---
    T2 = 12
    xs2 = jax.random.normal(ks[10], (T2, B, C), jnp.float32)
    ys2, hT2, cT2 = rnn_decoder_decode(xs2, h0, c0, prep)
    jax.block_until_ready((ys2, hT2, cT2))

    ref_ys2, ref_hT2, ref_cT2 = _reference_decode(xs2, h0, c0, params)
    assert ys2.shape == (T2, B, C)
    assert jnp.allclose(ys2, ref_ys2, atol=1e-5), "T=12 output mismatch"
    assert jnp.allclose(hT2, ref_hT2, atol=1e-5), "T=12 hidden mismatch"
    assert jnp.allclose(cT2, ref_cT2, atol=1e-5), "T=12 cell mismatch"

    print("KERNEL_OK")
</pallas_src>

<mosaic_0001>
module attributes {stable_mosaic.version = 11 : i64} {
  func.func @_lstm_decoder_kernel(%arg0: i32, %arg1: memref<1x8x16xf32, #tpu.memory_space<vmem>>, %arg2: memref<8x32xf32, #tpu.memory_space<vmem>>, %arg3: memref<8x32xf32, #tpu.memory_space<vmem>>, %arg4: memref<16x128xf32, #tpu.memory_space<vmem>>, %arg5: memref<1x128xf32, #tpu.memory_space<vmem>>, %arg6: memref<32x144xf32, #tpu.memory_space<vmem>>, %arg7: memref<1x16xf32, #tpu.memory_space<vmem>>, %arg8: memref<1x8x16xf32, #tpu.memory_space<vmem>>, %arg9: memref<8x32xf32, #tpu.memory_space<vmem>>, %arg10: memref<8x32xf32, #tpu.memory_space<vmem>>) attributes {dimension_semantics = [#tpu.dimension_semantics<arbitrary>], iteration_bounds = array<i64: 1>, scalar_prefetch = 0 : i64, scratch_operands = 0 : i64, tpu.core_type = #tpu.core_type<tc>, window_params = [{transform_indices = @transform_0, window_bounds = array<i64: 1, 8, 16>}, {pipeline_mode = #tpu.pipeline_mode<synchronous>, transform_indices = @transform_1, window_bounds = array<i64: 8, 32>}, {pipeline_mode = #tpu.pipeline_mode<synchronous>, transform_indices = @transform_2, window_bounds = array<i64: 8, 32>}, {pipeline_mode = #tpu.pipeline_mode<synchronous>, transform_indices = @transform_3, window_bounds = array<i64: 16, 128>}, {pipeline_mode = #tpu.pipeline_mode<synchronous>, transform_indices = @transform_4, window_bounds = array<i64: 1, 128>}, {pipeline_mode = #tpu.pipeline_mode<synchronous>, transform_indices = @transform_5, window_bounds = array<i64: 32, 144>}, {pipeline_mode = #tpu.pipeline_mode<synchronous>, transform_indices = @transform_6, window_bounds = array<i64: 1, 16>}, {transform_indices = @transform_7, window_bounds = array<i64: 1, 8, 16>}, {pipeline_mode = #tpu.pipeline_mode<synchronous>, transform_indices = @transform_8, window_bounds = array<i64: 8, 32>}, {pipeline_mode = #tpu.pipeline_mode<synchronous>, transform_indices = @transform_9, window_bounds = array<i64: 8, 32>}]} {
    %c0_i32 = arith.constant 0 : i32
    %0 = arith.cmpi eq, %arg0, %c0_i32 : i32
    %1 = arith.extui %0 : i1 to i32
    %c0_i32_0 = arith.constant 0 : i32
    %2 = arith.cmpi ne, %1, %c0_i32_0 : i32
    scf.if %2 {
      %c0_25 = arith.constant 0 : index
      %c0_26 = arith.constant 0 : index
      %41 = vector.load %arg2[%c0_25, %c0_26] : memref<8x32xf32, #tpu.memory_space<vmem>>, vector<8x32xf32>
      %c0_27 = arith.constant 0 : index
      %c0_28 = arith.constant 0 : index
      %42 = vector.load %arg9[%c0_27, %c0_28] : memref<8x32xf32, #tpu.memory_space<vmem>>, vector<8x32xf32>
      tpu.vector_store %arg9[%c0_27, %c0_28], %41 {strides = array<i32>} : memref<8x32xf32, #tpu.memory_space<vmem>>, vector<8x32xf32>,
      %c0_29 = arith.constant 0 : index
      %c0_30 = arith.constant 0 : index
      %43 = vector.load %arg3[%c0_29, %c0_30] : memref<8x32xf32, #tpu.memory_space<vmem>>, vector<8x32xf32>
      %c0_31 = arith.constant 0 : index
      %c0_32 = arith.constant 0 : index
      %44 = vector.load %arg10[%c0_31, %c0_32] : memref<8x32xf32, #tpu.memory_space<vmem>>, vector<8x32xf32>
      tpu.vector_store %arg10[%c0_31, %c0_32], %43 {strides = array<i32>} : memref<8x32xf32, #tpu.memory_space<vmem>>, vector<8x32xf32>,
    } else {
    }
    %c0 = arith.constant 0 : index
    %c0_1 = arith.constant 0 : index
    %c0_2 = arith.constant 0 : index
    %3 = vector.load %arg1[%c0, %c0_1, %c0_2] : memref<1x8x16xf32, #tpu.memory_space<vmem>>, vector<1x8x16xf32>
    %4 = vector.shape_cast %3 : vector<1x8x16xf32> to vector<8x16xf32>
    %c0_3 = arith.constant 0 : index
    %c0_4 = arith.constant 0 : index
    %5 = vector.load %arg4[%c0_3, %c0_4] : memref<16x128xf32, #tpu.memory_space<vmem>>, vector<16x128xf32>
    %cst = arith.constant dense<0.000000e+00> : vector<8x128xf32>
    %6 = tpu.matmul %4, %5, %cst {dimension_numbers = #tpu.dot_dimension_numbers<[1], [0], [0], [1], [0, 0, 1, 1], [], []>} : vector<8x16xf32>, vector<16x128xf32>, vector<8x128xf32> -> vector<8x128xf32>
    %c0_5 = arith.constant 0 : index
    %c0_6 = arith.constant 0 : index
    %7 = vector.load %arg5[%c0_5, %c0_6] : memref<1x128xf32, #tpu.memory_space<vmem>>, vector<1x128xf32>
    %8 = vector.broadcast %7 : vector<1x128xf32> to vector<8x128xf32>
    %9 = arith.addf %6, %8 : vector<8x128xf32>
    %c0_7 = arith.constant 0 : index
    %c0_8 = arith.constant 0 : index
    %10 = vector.load %arg6[%c0_7, %c0_8] : memref<32x144xf32, #tpu.memory_space<vmem>>, vector<32x144xf32>
    %c0_9 = arith.constant 0 : index
    %c0_10 = arith.constant 0 : index
    %11 = vector.load %arg7[%c0_9, %c0_10] : memref<1x16xf32, #tpu.memory_space<vmem>>, vector<1x16xf32>
    %c0_11 = arith.constant 0 : index
    %c0_12 = arith.constant 0 : index
    %12 = vector.load %arg9[%c0_11, %c0_12] : memref<8x32xf32, #tpu.memory_space<vmem>>, vector<8x32xf32>
    %c0_13 = arith.constant 0 : index
    %c0_14 = arith.constant 0 : index
    %13 = vector.load %arg10[%c0_13, %c0_14] : memref<8x32xf32, #tpu.memory_space<vmem>>, vector<8x32xf32>
    %cst_15 = arith.constant dense<0.000000e+00> : vector<8x144xf32>
    %14 = tpu.matmul %12, %10, %cst_15 {dimension_numbers = #tpu.dot_dimension_numbers<[1], [0], [0], [1], [0, 0, 1, 1], [], []>} : vector<8x32xf32>, vector<32x144xf32>, vector<8x144xf32> -> vector<8x144xf32>
    %15 = vector.extract_strided_slice %14 {offsets = [0, 0], sizes = [8, 128], strides = [1, 1]} : vector<8x144xf32> to vector<8x128xf32>
    %16 = arith.addf %9, %15 : vector<8x128xf32>
    %17 = arith.negf %16 : vector<8x128xf32>
    %18 = math.exp %17 : vector<8x128xf32>
    %cst_16 = arith.constant 1.000000e+00 : f32
    %19 = vector.broadcast %cst_16 : f32 to vector<8x128xf32>
    %20 = arith.addf %19, %18 : vector<8x128xf32>
    %21 = arith.divf %19, %20 : vector<8x128xf32>
    %22 = math.tanh %16 : vector<8x128xf32>
    %23 = vector.extract_strided_slice %21 {offsets = [0, 0], sizes = [8, 32], strides = [1, 1]} : vector<8x128xf32> to vector<8x32xf32>
    %24 = vector.extract_strided_slice %21 {offsets = [0, 32], sizes = [8, 32], strides = [1, 1]} : vector<8x128xf32> to vector<8x32xf32>
    %25 = vector.extract_strided_slice %22 {offsets = [0, 64], sizes = [8, 32], strides = [1, 1]} : vector<8x128xf32> to vector<8x32xf32>
    %26 = vector.extract_strided_slice %21 {offsets = [0, 96], sizes = [8, 32], strides = [1, 1]} : vector<8x128xf32> to vector<8x32xf32>
    %27 = arith.mulf %24, %13 : vector<8x32xf32>
    %28 = arith.mulf %23, %25 : vector<8x32xf32>
    %29 = arith.addf %27, %28 : vector<8x32xf32>
    %30 = math.tanh %29 : vector<8x32xf32>
    %31 = arith.mulf %26, %30 : vector<8x32xf32>
    %32 = vector.extract_strided_slice %10 {offsets = [0, 128], sizes = [32, 16], strides = [1, 1]} : vector<32x144xf32> to vector<32x16xf32>
    %cst_17 = arith.constant dense<0.000000e+00> : vector<8x16xf32>
    %33 = tpu.matmul %31, %32, %cst_17 {dimension_numbers = #tpu.dot_dimension_numbers<[1], [0], [0], [1], [0, 0, 1, 1], [], []>} : vector<8x32xf32>, vector<32x16xf32>, vector<8x16xf32> -> vector<8x16xf32>
    %34 = vector.broadcast %11 : vector<1x16xf32> to vector<8x16xf32>
    %35 = arith.addf %33, %34 : vector<8x16xf32>
    %c0_18 = arith.constant 0 : index
    %c0_19 = arith.constant 0 : index
    %c0_20 = arith.constant 0 : index
    %36 = vector.load %arg8[%c0_18, %c0_19, %c0_20] : memref<1x8x16xf32, #tpu.memory_space<vmem>>, vector<1x8x16xf32>
    %37 = vector.shape_cast %36 : vector<1x8x16xf32> to vector<8x16xf32>
    %38 = vector.shape_cast %35 : vector<8x16xf32> to vector<1x8x16xf32>
    tpu.vector_store %arg8[%c0_18, %c0_19, %c0_20], %38 {strides = array<i32>} : memref<1x8x16xf32, #tpu.memory_space<vmem>>, vector<1x8x16xf32>,
    %c0_21 = arith.constant 0 : index
    %c0_22 = arith.constant 0 : index
    %39 = vector.load %arg9[%c0_21, %c0_22] : memref<8x32xf32, #tpu.memory_space<vmem>>, vector<8x32xf32>
    tpu.vector_store %arg9[%c0_21, %c0_22], %31 {strides = array<i32>} : memref<8x32xf32, #tpu.memory_space<vmem>>, vector<8x32xf32>,
    %c0_23 = arith.constant 0 : index
    %c0_24 = arith.constant 0 : index
    %40 = vector.load %arg10[%c0_23, %c0_24] : memref<8x32xf32, #tpu.memory_space<vmem>>, vector<8x32xf32>
    tpu.vector_store %arg10[%c0_23, %c0_24], %29 {strides = array<i32>} : memref<8x32xf32, #tpu.memory_space<vmem>>, vector<8x32xf32>,
    return
  }
  func.func @transform_0(%arg0: i32) -> (i32, i32, i32) {
    %c0_i32 = arith.constant 0 : i32
    %c0_i32_0 = arith.constant 0 : i32
    %c0_i32_1 = arith.constant 0 : i32
    return %arg0, %c0_i32, %c0_i32_0 : i32, i32, i32
  }
  func.func @transform_1(%arg0: i32) -> (i32, i32) {
    %c0_i32 = arith.constant 0 : i32
    %c0_i32_0 = arith.constant 0 : i32
    %c0_i32_1 = arith.constant 0 : i32
    return %c0_i32, %c0_i32_0 : i32, i32
  }
  func.func @transform_2(%arg0: i32) -> (i32, i32) {
    %c0_i32 = arith.constant 0 : i32
    %c0_i32_0 = arith.constant 0 : i32
    %c0_i32_1 = arith.constant 0 : i32
    return %c0_i32, %c0_i32_0 : i32, i32
  }
  func.func @transform_3(%arg0: i32) -> (i32, i32) {
    %c0_i32 = arith.constant 0 : i32
    %c0_i32_0 = arith.constant 0 : i32
    %c0_i32_1 = arith.constant 0 : i32
    return %c0_i32, %c0_i32_0 : i32, i32
  }
  func.func @transform_4(%arg0: i32) -> (i32, i32) {
    %c0_i32 = arith.constant 0 : i32
    %c0_i32_0 = arith.constant 0 : i32
    %c0_i32_1 = arith.constant 0 : i32
    return %c0_i32, %c0_i32_0 : i32, i32
  }
  func.func @transform_5(%arg0: i32) -> (i32, i32) {
    %c0_i32 = arith.constant 0 : i32
    %c0_i32_0 = arith.constant 0 : i32
    %c0_i32_1 = arith.constant 0 : i32
    return %c0_i32, %c0_i32_0 : i32, i32
  }
  func.func @transform_6(%arg0: i32) -> (i32, i32) {
    %c0_i32 = arith.constant 0 : i32
    %c0_i32_0 = arith.constant 0 : i32
    %c0_i32_1 = arith.constant 0 : i32
    return %c0_i32, %c0_i32_0 : i32, i32
  }
  func.func @transform_7(%arg0: i32) -> (i32, i32, i32) {
    %c0_i32 = arith.constant 0 : i32
    %c0_i32_0 = arith.constant 0 : i32
    %c0_i32_1 = arith.constant 0 : i32
    return %arg0, %c0_i32, %c0_i32_0 : i32, i32, i32
  }
  func.func @transform_8(%arg0: i32) -> (i32, i32) {
    %c0_i32 = arith.constant 0 : i32
    %c0_i32_0 = arith.constant 0 : i32
    %c0_i32_1 = arith.constant 0 : i32
    return %c0_i32, %c0_i32_0 : i32, i32
  }
  func.func @transform_9(%arg0: i32) -> (i32, i32) {
    %c0_i32 = arith.constant 0 : i32
    %c0_i32_0 = arith.constant 0 : i32
    %c0_i32_1 = arith.constant 0 : i32
    return %c0_i32, %c0_i32_0 : i32, i32
  }
}

</mosaic_0001>

<bundles_post_ra>
// kernel: tpu_custom_call.1
= control target key start
LH: loop header
LB: loop body
LE: loop exit
PB: predicated region body
PF: predicated region fallthrough
CT: control target
= control target key end

     0   :  { %15 = vsyncpa [#allocation3], 0  ;;  %s882_s0 = inlined_call_operand.hbm [shape: f32[1,8,16], index: 0, kind: input, shape index: {}]   ;;  %s883_s1 = inlined_call_operand.hbm [shape: f32[8,32], index: 1, kind: input, shape index: {}]   ;;  %s884_s2 = inlined_call_operand.hbm [shape: f32[8,32], index: 2, kind: input, shape index: {}]   ;;  %s885_s3 = inlined_call_operand.hbm [shape: f32[16,128], index: 3, kind: input, shape index: {}]   ;;  %s886_s4 = inlined_call_operand.vmem [shape: f32[1,128], index: 4, kind: input, shape index: {}]   ;;  %s887_s5 = inlined_call_operand.hbm [shape: f32[32,144], index: 5, kind: input, shape index: {}]   ;;  %s888_s6 = inlined_call_operand.vmem [shape: f32[1,16], index: 6, kind: input, shape index: {}]   ;;  %s889_s7 = inlined_call_operand.hbm [shape: f32[1,8,16], index: 7, kind: output, shape index: {0}]   ;;  %s890_s8 = inlined_call_operand.hbm [shape: f32[8,32], index: 8, kind: output, shape index: {1}]   ;;  %s891_s9 = inlined_call_operand.hbm [shape: f32[8,32], index: 9, kind: output, shape index: {2}]  }
   0x1   :  { %16 = vsyncpa [#allocation6], 0 }
   0x2   :  { %17 = vsyncpa [#allocation9], 0 }
   0x3   :  { %18 = vsyncpa [#allocation4], 0 }
   0x4   :  { %19 = vsyncpa [#allocation13], 0  ;;  %s697_s30 = smov [#allocation5]   ;;  %s698_s11 = smov [#allocation8]  }
   0x5   :  { %s36_s10 = sshll.u32 %s697_s30, 4  ;;  %s55_s12 = sshll.u32 %s698_s11, 4  ;;  %s37_s10 = int_to_ptr.vmem [resolvable:$true] %s36_s10  ;;  %s765_s12 = int_to_ptr.vmem [resolvable:$true] %s55_s12 }
   0x6   :  { %s511_s15 = scalar_lea.hbm %s883_s1, 128 }
   0x7   :  { %p512_p0 = scmp.ne.s32.totalorder %s883_s1, %s511_s15  ;;  %p515_p1 = scmp.lt.u32.totalorder %s511_s15, %s883_s1 }
   0x9   :  { %p517_p2 = pnand %p515_p1, %p512_p0 }
   0xb   :  { %520 = shalt.err (!%p517_p2)
}
   0xc   :  { %s521_s20 = scalar_lea.vmem %s37_s10, 128  ;;  %p526_p4 = scmp.lt.s32.totalorder %s37_s10, %s37_s10 }
   0xd   :  { %p522_p3 = scmp.ne.s32.totalorder %s37_s10, %s521_s20  ;;  %p527_p5 = scmp.lt.s32.totalorder %s521_s20, %s521_s20 }
   0xf   :  { %p528_p6 = por %p527_p5, %p526_p4 }
  0x11   :  { %p529_p7 = pnand %p528_p6, %p522_p3 }
  0x13   :  { %532 = shalt.err (!%p529_p7)
}
  0x14   :  { %39 = dma.hbm_to_vmem [thread:$0]  %s883_s1, 128, %s37_s10, [#allocation6]  }
  0x15   :  { %s533_s25 = scalar_lea.hbm %s885_s3, 256 }
  0x16   :  { %p534_p8 = scmp.ne.s32.totalorder %s885_s3, %s533_s25  ;;  %p537_p9 = scmp.lt.u32.totalorder %s533_s25, %s885_s3 }
  0x18   :  { %p539_p10 = pnand %p537_p9, %p534_p8 }
  0x1a   :  { %542 = shalt.err (!%p539_p10)
}
  0x1b   :  { %s543_s30 = scalar_lea.vmem %s765_s12, 256  ;;  %p548_p12 = scmp.lt.s32.totalorder %s765_s12, %s765_s12 }
  0x1c   :  { %p544_p11 = scmp.ne.s32.totalorder %s765_s12, %s543_s30  ;;  %p549_p13 = scmp.lt.s32.totalorder %s543_s30, %s543_s30 }
  0x1e   :  { %p550_p0 = por %p549_p13, %p548_p12 }
  0x20   :  { %p551_p1 = pnand %p550_p0, %p544_p11 }
  0x22   :  { %554 = shalt.err (!%p551_p1)
}
  0x23   :  { %s699_s1 = smov 128   ;;  %s700_s10 = smov 8  }
  0x24   :  { %61 = dma.hbm_to_vmem [thread:$0]  %s885_s3, 256, %s765_s12, [#allocation9], %s699_s1, %s699_s1, %s700_s10  }
  0x25   :  { %s701_s14 = smov [#allocation2]   ;;  %s702_s16 = smov [#allocation7]  }
  0x26   :  { %s26_s15 = sshll.u32 %s701_s14, 4  ;;  %s46_s17 = sshll.u32 %s702_s16, 4  ;;  %s27_s15 = int_to_ptr.vmem [resolvable:$true] %s26_s15  ;;  %s47_s17 = int_to_ptr.vmem [resolvable:$true] %s46_s17 }
  0x27   :  { %s555_s20 = scalar_lea.hbm %s882_s0, 128 }
  0x28   :  { %p556_p2 = scmp.ne.s32.totalorder %s882_s0, %s555_s20  ;;  %p559_p3 = scmp.lt.u32.totalorder %s555_s20, %s882_s0 }
  0x2a   :  { %p561_p4 = pnand %p559_p3, %p556_p2 }
  0x2c   :  { %564 = shalt.err (!%p561_p4)
}
  0x2d   :  { %s565_s3 = scalar_lea.vmem %s27_s15, 128  ;;  %p570_p6 = scmp.lt.s32.totalorder %s27_s15, %s27_s15 }
  0x2e   :  { %p566_p5 = scmp.ne.s32.totalorder %s27_s15, %s565_s3  ;;  %p571_p7 = scmp.lt.s32.totalorder %s565_s3, %s565_s3 }
  0x30   :  { %p572_p8 = por %p571_p7, %p570_p6 }
  0x32   :  { %p573_p9 = pnand %p572_p8, %p566_p5 }
  0x34   :  { %576 = shalt.err (!%p573_p9)
}
  0x35   :  { %29 = dma.hbm_to_vmem [thread:$0]  %s882_s0, 128, %s27_s15, [#allocation3]  }
  0x36   :  { %s577_s28 = scalar_lea.hbm %s884_s2, 128 }
  0x37   :  { %p578_p10 = scmp.ne.s32.totalorder %s884_s2, %s577_s28  ;;  %p581_p11 = scmp.lt.u32.totalorder %s577_s28, %s884_s2 }
  0x39   :  { %p583_p12 = pnand %p581_p11, %p578_p10 }
  0x3b   :  { %586 = shalt.err (!%p583_p12)
}
  0x3c   :  { %s587_s11 = scalar_lea.vmem %s47_s17, 128  ;;  %p592_p0 = scmp.lt.s32.totalorder %s47_s17, %s47_s17 }
  0x3d   :  { %p588_p13 = scmp.ne.s32.totalorder %s47_s17, %s587_s11  ;;  %p593_p1 = scmp.lt.s32.totalorder %s587_s11, %s587_s11 }
  0x3f   :  { %p594_p2 = por %p593_p1, %p592_p0 }
  0x41   :  { %p595_p3 = pnand %p594_p2, %p588_p13 }
  0x43   :  { %598 = shalt.err (!%p595_p3)
}
  0x44   :  { %49 = dma.hbm_to_vmem [thread:$0]  %s884_s2, 128, %s47_s17, [#allocation6]  }
  0x45   :  { %s703_s14 = smov [#allocation10]   ;;  %s599_s19 = scalar_lea.hbm %s887_s5, 1024 }
  0x46   :  { %s69_s15 = sshll.u32 %s703_s14, 4  ;;  %p600_p4 = scmp.ne.s32.totalorder %s887_s5, %s599_s19  ;;  %s70_s15 = int_to_ptr.vmem [resolvable:$true] %s69_s15 }
  0x47   :  { %p603_p5 = scmp.lt.u32.totalorder %s599_s19, %s887_s5 }
  0x49   :  { %p605_p6 = pnand %p603_p5, %p600_p4 }
  0x4b   :  { %608 = shalt.err (!%p605_p6)
}
  0x4c   :  { %s609_s24 = scalar_lea.vmem %s70_s15, 1024  ;;  %p614_p8 = scmp.lt.s32.totalorder %s70_s15, %s70_s15 }
  0x4d   :  { %p610_p7 = scmp.ne.s32.totalorder %s70_s15, %s609_s24  ;;  %p615_p9 = scmp.lt.s32.totalorder %s609_s24, %s609_s24 }
  0x4f   :  { %p616_p10 = por %p615_p9, %p614_p8 }
  0x51   :  { %p617_p11 = pnand %p616_p10, %p610_p7 }
  0x53   :  { %620 = shalt.err (!%p617_p11)
}
  0x54   :  { %s704_s2 = smov 256   ;;  %s705_s17 = smov 16  }
  0x55   :  { %75 = dma.hbm_to_vmem [thread:$0]  %s887_s5, 1024, %s70_s15, [#allocation9], %s704_s2, %s704_s2, %s705_s17  }
  0x56   :  { %687 = dma.done.wait [#allocation3], 128  }
  0x57   :  { %688 = vsyncadd [#allocation3], 4294967168 }
  0x58   :  { %689 = dma.done.wait [#allocation6], 256  }
  0x59   :  { %690 = vsyncadd [#allocation6], 4294967040 }
  0x5a   :  { %691 = dma.done.wait [#allocation9], 1280  }
  0x5b   :  { %692 = vsyncadd [#allocation9], 4294966016  ;;  %v706_v0 = vmov 0.0|0.0   ;;  %vm707_vm0 = vmmov 0   ;;  %v708_v1 = vmov 0.0   ;;  %v103_v2 = vld [vmem:[#allocation8] sm:$0xff] }
  0x5c   :  { %465 = vmatprep.subr.bf16.mxu0 %v706_v0  ;;  %451 = vmatprep.mubr.msk.f32.mxu0 %vm707_vm0, %v708_v1  ;;  %v104_v3 = vld [vmem:[#allocation8 + $0x8] sm:$0xff]  ;;  %v187_v5 = vld [vmem:[#allocation10 + $0x8] sm:$0xff]  ;;  %v186_v7 = vld [vmem:[#allocation10] sm:$0xff]  ;;  %vm98_vm1 = vcmask 261120   ;;  %vm112_vm2 = vcmask 130048   ;;  %s709_s26 = smov 64  }
  0x5d   :  { %476 = vmatprep.subr.bf16.mxu1 %v706_v0  ;;  %462 = vmatprep.mubr.msk.f32.mxu1 %vm707_vm0, %v708_v1  ;;  %v466_v4 = vpack.c.bf16 %v104_v3, %v103_v2  ;;  %v189_v6 = vld [vmem:[#allocation10 + $0x18] sm:$0xff]  ;;  %v188_v9 = vld [vmem:[#allocation10 + $0x10] sm:$0xff]  ;;  %v191_v10 = vld [vmem:[#allocation10 + $0x28] sm:$0xff]  ;;  %s710_s27 = smov 32   ;;  %s712_s28 = smov [#allocation12]  }
  0x5e   :  { %v468_v8 = vpack.c.bf16 %v189_v6, %v187_v5  ;;  %v193_v11 = vld [vmem:[#allocation10 + $0x38] sm:$0xff]  ;;  %v470_v13 = vpack.c.bf16 %v188_v9, %v186_v7  ;;  %v97_v14 = vld [vmem:[#allocation5] sm:$0xff]  ;;  %v192_v17 = vld [vmem:[#allocation10 + $0x30] sm:$0xff]  ;;  %s405_s29 = sshll.u32 %s712_s28, 4  ;;  %s406_s29 = int_to_ptr.vmem [resolvable:$true] %s405_s29 }
  0x5f   :  { %467 = vmatpush3.bf16.msra.mxu0 %v466_v4  ;;  %v102_v12 = vld [vmem:[#allocation2] sm:$0xff]  ;;  %v472_v15 = vpack.c.bf16 %v193_v11, %v191_v10  ;;  %v190_v16 = vld [vmem:[#allocation10 + $0x20] sm:$0xff]  ;;  %99 = vst.msk [vmem:[#allocation12] sm:$0xff] %vm98_vm1, %v97_v14  ;;  %v100_v18 = vld [vmem:[#allocation7] sm:$0xff]  ;;  %s621_s30 = scalar_lea.vmem %s406_s29, 128  ;;  %p626_p13 = scmp.lt.s32.totalorder %s406_s29, %s406_s29 }
  0x60   :  { %469 = vmatprep.subr.bf16.mxu0 %v468_v8  ;;  %478 = vmatpush3.bf16.msra.mxu1 %v468_v8  ;;  %101 = vst.msk [vmem:[#allocation14] sm:$0xff] %vm98_vm1, %v100_v18  ;;  %v474_v19 = vpack.c.bf16 %v192_v17, %v190_v16  ;;  %v433_v21 = vld [vmem:[%s886_s4] ss:$0 sm:$0xff]  ;;  %s711_s4 = smov 96   ;;  %p622_p12 = scmp.ne.s32.totalorder %s406_s29, %s621_s30 }
  0x61   :  { %479 = vmatprep.subr.bf16.mxu1 %v706_v0  ;;  %p627_p0 = scmp.lt.s32.totalorder %s621_s30, %s621_s30 }
  0x62   :  { %452 = vmatmul.mubr.msk.f32.vlgmr.msra.gmra.mrb[0].mxu0 %vm112_vm2, %v102_v12 }
  0x63   :  { %471 = vmatpush1.bf16.msra.mxu0 %v470_v13  ;;  %265 = vmatprep.mubr.f32.mxu0 %v708_v1  ;;  %p628_p1 = por %p627_p0, %p626_p13 }
  0x64   :  { %473 = vmatprep.subr.bf16.mxu0 %v472_v15  ;;  %481 = vmatpush3.bf16.msra.mxu1 %v472_v15 }
  0x65   :  { %p629_p2 = pnand %p628_p1, %p622_p12 }
  0x66   :  { %v195_v20 = vld [vmem:[#allocation12] sm:$0xff] }
  0x67   :  { %475 = vmatpush1.bf16.msra.mxu0 %v474_v19  ;;  %v196_v26 = vld [vmem:[#allocation14] sm:$0xff] }
  0x6a   :  { %435 = vmatmul.mubr.msk.f32.vlgmr.msra.gmra.mrb[0].mxu0 %vm98_vm1, %v195_v20 }
 0x13d   :  { %v267_v22 = vpop.f32.mrb[0].mxu0 }
 0x13e   :  { %v482_v23 = vadd.f32 %v433_v21, %v267_v22  ;;  %v269_v24 = vpop.f32.mrb[1].mxu0 }
 0x140   :  { %503 = vtanh.f32 %v482_v23  ;;  %v436_v27 = vmul.f32 -1.442695, %v482_v23 }
 0x142   :  { %505 = vpow2.f32 %v436_v27 }
 0x14a   :  { %v504_v25 = vpop.eup %503 }
 0x14b   :  { %285 = vrot.lane.b32.xlu0 %v504_v25, %s709_s26 }
 0x14c   :  { %v506_v28 = vpop.eup %505 }
 0x14d   :  { %v275_v29 = vadd.f32 1.0, %v506_v28 }
 0x14f   :  { %280 = vrot.lane.b32.xlu0 %v196_v26, %s710_s27  ;;  %507 = vrcp.f32 %v275_v29 }
 0x159   :  { %v508_v30 = vpop.eup %507 }
 0x1bd   :  { %v286_v31 = vpop.permute.xlu0 %285 }
 0x1be   :  { %v288_v32 = vmul.f32 %v508_v30, %v286_v31 }
 0x1c0   :  { %290 = vrot.lane.b32.xlu1 %v288_v32, %s710_s27 }
 0x1c1   :  { %v281_v33 = vpop.permute.xlu0 %280 }
 0x1c2   :  { %v283_v34 = vmul.f32 %v508_v30, %v281_v33 }
 0x232   :  { %v291_v35 = vpop.permute.xlu1 %290 }
 0x233   :  { %v293_v36 = vadd.f32 %v291_v35, %v283_v34 }
 0x235   :  { %509 = vtanh.f32 %v293_v36 }
 0x23f   :  { %v510_v37 = vpop.eup %509 }
 0x240   :  { %296 = vrot.lane.b32.xlu1 %v510_v37, %s709_s26 }
 0x244   :  { %385 = vrot.lane.b32.xlu1 %v293_v36, %s711_s4 }
 0x2b2   :  { %v297_v38 = vpop.permute.xlu1 %296 }
 0x2b3   :  { %v299_v39 = vmul.f32 %v508_v30, %v297_v38 }
 0x2b5   :  { %307 = vrot.lane.b32.xlu0 %v299_v39, %s710_s27 }
 0x2b6   :  { %v386_v40 = vpop.permute.xlu1 %385 }
 0x2b7   :  { %388 = vst.msk [vmem:[#allocation14] sm:$0xff] %vm98_vm1, %v386_v40 }
 0x327   :  { %v308_v41 = vpop.permute.xlu0 %307 }
 0x328   :  { %383 = vst.msk [vmem:[#allocation12] sm:$0xff] %vm98_vm1, %v308_v41  ;;  %463 = vmatmul.mubr.msk.f32.vlgmr.msra.gmra.mrb[0].mxu1 %vm98_vm1, %v308_v41 }
 0x329   :  { %632 = shalt.err (!%p629_p2)
}
 0x32a   :  { %s633_s11 = scalar_lea.hbm %s890_s8, 128 }
 0x32b   :  { %p634_p3 = scmp.ne.s32.totalorder %s890_s8, %s633_s11  ;;  %p637_p4 = scmp.lt.u32.totalorder %s633_s11, %s890_s8 }
 0x32d   :  { %p639_p5 = pnand %p637_p4, %p634_p3 }
 0x32f   :  { %642 = shalt.err (!%p639_p5)
}
 0x330   :  { %408 = dma.vmem_to_hbm [thread:$0]  %s406_s29, 128, %s890_s8, [#allocation13]  }
 0x331   :  { %s713_s19 = smov [#allocation14]  }
 0x332   :  { %s415_s20 = sshll.u32 %s713_s19, 4  ;;  %s416_s20 = int_to_ptr.vmem [resolvable:$true] %s415_s20 }
 0x333   :  { %s643_s21 = scalar_lea.vmem %s416_s20, 128  ;;  %p648_p7 = scmp.lt.s32.totalorder %s416_s20, %s416_s20 }
 0x334   :  { %p644_p6 = scmp.ne.s32.totalorder %s416_s20, %s643_s21  ;;  %p649_p8 = scmp.lt.s32.totalorder %s643_s21, %s643_s21 }
 0x336   :  { %p650_p9 = por %p649_p8, %p648_p7 }
 0x338   :  { %p651_p10 = pnand %p650_p9, %p644_p6 }
 0x33a   :  { %654 = shalt.err (!%p651_p10)
}
 0x33b   :  { %s655_s24 = scalar_lea.hbm %s891_s9, 128 }
 0x33c   :  { %p656_p11 = scmp.ne.s32.totalorder %s891_s9, %s655_s24  ;;  %p659_p12 = scmp.lt.u32.totalorder %s655_s24, %s891_s9 }
 0x33e   :  { %p661_p13 = pnand %p659_p12, %p656_p11 }
 0x340   :  { %664 = shalt.err (!%p661_p13)
}
 0x341   :  { %418 = dma.vmem_to_hbm [thread:$0]  %s416_s20, 128, %s891_s9, [#allocation13]   ;;  %v437_v42 = vld [vmem:[%s888_s6] ss:$0 sm:$0xff] }
 0x342   :  { %s714_s27 = smov [#allocation11]  }
 0x343   :  { %s395_s4 = sshll.u32 %s714_s27, 4  ;;  %s396_s4 = int_to_ptr.vmem [resolvable:$true] %s395_s4 }
 0x344   :  { %s665_s28 = scalar_lea.vmem %s396_s4, 128  ;;  %p670_p1 = scmp.lt.s32.totalorder %s396_s4, %s396_s4 }
 0x345   :  { %p666_p0 = scmp.ne.s32.totalorder %s396_s4, %s665_s28  ;;  %p671_p2 = scmp.lt.s32.totalorder %s665_s28, %s665_s28 }
 0x347   :  { %p672_p3 = por %p671_p2, %p670_p1 }
 0x349   :  { %p673_p4 = pnand %p672_p3, %p666_p0 }
 0x3fb   :  { %v377_v43 = vpop.f32.mrb[0].mxu1 }
 0x3fc   :  { %v378_v44 = vadd.f32 %v437_v42, %v377_v43  ;;  %v464_v45 = vpop.f32.mrb[1].mxu1 }
 0x3fe   :  { %381 = vst.msk [vmem:[#allocation11] sm:$0xff] %vm112_vm2, %v378_v44 }
 0x3ff   :  { %676 = shalt.err (!%p673_p4)
}
 0x400   :  { %s677_s30 = scalar_lea.hbm %s889_s7, 128 }
 0x401   :  { %p678_p5 = scmp.ne.s32.totalorder %s889_s7, %s677_s30  ;;  %p681_p6 = scmp.lt.u32.totalorder %s677_s30, %s889_s7 }
 0x403   :  { %p683_p7 = pnand %p681_p6, %p678_p5 }
 0x405   :  { %686 = shalt.err (!%p683_p7)
}
 0x406   :  { %398 = dma.vmem_to_hbm [thread:$0]  %s396_s4, 128, %s889_s7, [#allocation4]  }
 0x407   :  { %693 = dma.done.wait [#allocation4], 128  }
 0x408   :  { %694 = vsyncadd [#allocation4], 4294967168 }
 0x409   :  { %695 = dma.done.wait [#allocation13], 256  }
 0x40a   :  { %696 = vsyncadd [#allocation13], 4294967040 }
 0x40b   :  { %428 = vsyncpa [#allocation3], 1 }
 0x40c   :  { %429 = vsyncpa [#allocation6], 1 }
 0x40d   :  { %430 = vsyncpa [#allocation9], 1 }
 0x40e   :  { %431 = vsyncpa [#allocation4], 1 }
 0x40f   :  { %432 = vsyncpa [#allocation13], 1 }

</bundles_post_ra>
